<compile_context>
chip_gen: v7x
topology: tpu7x:2x2x1
jax: 0.10.0
libtpu: 0.0.40
codegen_flags: <defaults>
</compile_context>

<pallas_src>
import functools

import jax
import jax.numpy as jnp
from jax import lax
from jax.experimental import pallas as pl
from jax.experimental.pallas import tpu as pltpu


def _round_up(x, m):
    return ((x + m - 1) // m) * m


def _consistency_kernel(e1_ref, e2_ref, out_ref, acc_ref, *, valid_rows,
                        tile_m, tiles_per_chunk):
    c = pl.program_id(0)          # chunk (parallel across cores on v7x)
    i = pl.program_id(1)          # row tile within the chunk (reduction)

    @pl.when(i == 0)
    def _():
        acc_ref[...] = jnp.zeros_like(acc_ref)

    x1 = e1_ref[...].astype(jnp.float32)               # (tile_m, C)
    x2 = e2_ref[...].astype(jnp.float32)               # (tile_m, C)

    dot = jnp.sum(x1 * x2, axis=-1, keepdims=True)     # (tile_m, 1)
    n1sq = jnp.sum(x1 * x1, axis=-1, keepdims=True)
    n2sq = jnp.sum(x2 * x2, axis=-1, keepdims=True)

    # PyTorch: cos = dot / sqrt(clamp(|x1|^2 * |x2|^2, min=eps^2)), eps=1e-8.
    # Single rsqrt instead of two sqrts + a divide.
    eps2 = jnp.float32(1e-16)
    cos = dot * lax.rsqrt(jnp.maximum(n1sq * n2sq, eps2))

    per_row = 1.0 - cos                                 # (tile_m, 1)

    # Mask rows past the logical end of the data.  Covers both the ragged
    # last tile and the "phantom" tiles of the second chunk when the tile
    # count is odd (their DMA reads clamped-but-valid memory; the select
    # discards any garbage, including NaN/Inf).
    row_start = (c * tiles_per_chunk + i) * tile_m
    row_ids = row_start + lax.broadcasted_iota(jnp.int32, (tile_m, 1), 0)
    per_row = jnp.where(row_ids < valid_rows, per_row, 0.0)

    # Pure vector accumulation every step (no per-step cross-lane reduce,
    # no per-step scalar read-modify-write).
    acc_ref[...] += per_row

    @pl.when(i == pl.num_programs(1) - 1)
    def _():
        total = jnp.sum(acc_ref[...])                   # one cross-lane reduce
        sub = lax.broadcasted_iota(jnp.int32, (8, 128), 0)
        lane = lax.broadcasted_iota(jnp.int32, (8, 128), 1)
        out_ref[...] = jnp.where((sub == 0) & (lane == 0), total, 0.0)


def consistency_loss(emb_1, emb_2, *, loss_factor=0.1, tile_m=None,
                     num_chunks=2):
    """emb_1, emb_2: [..., C] (e.g. [B, N, C]) -> scalar float32 loss."""
    assert emb_1.shape == emb_2.shape
    C = emb_1.shape[-1]
    M = 1
    for d in emb_1.shape[:-1]:
        M *= d

    x1 = emb_1.reshape(M, C)
    x2 = emb_2.reshape(M, C)

    itemsize = jnp.dtype(emb_1.dtype).itemsize
    row_align = 8 * max(1, 4 // itemsize)        # f32: 8, bf16: 16, int8: 32

    if tile_m is None:
        # Biggest row tile whose double-buffered working set
        # (2 inputs x 2 pipeline buffers x tile_m x C) stays within ~32 MiB.
        budget = 32 * 1024 * 1024
        tile_m = budget // (4 * C * itemsize)
        tile_m = min(1024, tile_m)
    tile_m = min(tile_m, _round_up(M, row_align))   # don't exceed the data
    tile_m = max(row_align, (tile_m // row_align) * row_align)

    n_tiles = pl.cdiv(M, tile_m)
    num_chunks = int(max(1, min(num_chunks, n_tiles)))
    tiles_per_chunk = pl.cdiv(n_tiles, num_chunks)
    grid = (num_chunks, tiles_per_chunk)

    def in_map(c, i):
        # Clamp so phantom tiles (odd tile counts) still DMA in-bounds data;
        # the in-kernel row mask discards their contribution.
        return (jnp.minimum(c * tiles_per_chunk + i, n_tiles - 1), 0)

    kernel = functools.partial(
        _consistency_kernel,
        valid_rows=M,
        tile_m=tile_m,
        tiles_per_chunk=tiles_per_chunk,
    )

    # 2 inputs x 2 pipeline buffers + accumulator + output blocks + headroom.
    vmem_need = 4 * tile_m * C * itemsize + 4 * tile_m + 2 * 8 * 128 * 4
    vmem_limit = int(max(16 * 1024 * 1024, vmem_need + 4 * 1024 * 1024))

    out = pl.pallas_call(
        kernel,
        out_shape=jax.ShapeDtypeStruct((num_chunks * 8, 128), jnp.float32),
        grid=grid,
        in_specs=[
            pl.BlockSpec((tile_m, C), in_map),
            pl.BlockSpec((tile_m, C), in_map),
        ],
        out_specs=pl.BlockSpec((8, 128), lambda c, i: (c, 0)),
        scratch_shapes=[pltpu.VMEM((tile_m, 1), jnp.float32)],
        compiler_params=pltpu.CompilerParams(
            dimension_semantics=("parallel", "arbitrary"),
            vmem_limit_bytes=vmem_limit),
    )(x1, x2)

    # Non-selected output entries are exactly 0, so a plain sum combines the
    # per-chunk partials; scale by loss_factor / M to match the mean.
    return jnp.sum(out) * jnp.float32(loss_factor / M)


def _reference(emb_1, emb_2, loss_factor=0.1, eps=1e-8):
    x1 = emb_1.astype(jnp.float32)
    x2 = emb_2.astype(jnp.float32)
    dot = jnp.sum(x1 * x2, axis=-1)
    n1sq = jnp.sum(x1 * x1, axis=-1)
    n2sq = jnp.sum(x2 * x2, axis=-1)
    cos = dot / jnp.sqrt(jnp.maximum(n1sq * n2sq, eps * eps))
    return jnp.mean((1.0 - cos) * loss_factor)


if __name__ == "__main__":
    # ConsistencyLoss has no learnable parameters (only config scalars),
    # so there is nothing to initialize beyond the inputs.
    key = jax.random.PRNGKey(0)
    k1, k2 = jax.random.split(key)
    B, N, C = 2, 8, 32                     # emb: [b, n, c]
    emb_1 = jax.random.normal(k1, (B, N, C), dtype=jnp.float32)
    emb_2 = jax.random.normal(k2, (B, N, C), dtype=jnp.float32)

    loss = consistency_loss(emb_1, emb_2, loss_factor=0.1)
    loss = jax.block_until_ready(loss)

    ref = _reference(emb_1, emb_2, loss_factor=0.1)
    assert jnp.allclose(loss, ref, rtol=1e-5, atol=1e-6), (loss, ref)

    print("KERNEL_OK")
</pallas_src>

<mosaic_0001>
module attributes {stable_mosaic.version = 11 : i64} {
  func.func @_consistency_kernel(%arg0: i32, %arg1: i32, %arg2: memref<16x32xf32, #tpu.memory_space<vmem>>, %arg3: memref<16x32xf32, #tpu.memory_space<vmem>>, %arg4: memref<8x128xf32, #tpu.memory_space<vmem>>, %arg5: memref<16x1xf32, #tpu.memory_space<vmem>>) attributes {dimension_semantics = [#tpu.dimension_semantics<parallel>, #tpu.dimension_semantics<arbitrary>], iteration_bounds = array<i64: 1, 1>, scalar_prefetch = 0 : i64, scratch_operands = 1 : i64, tpu.core_type = #tpu.core_type<tc>, window_params = [{transform_indices = @transform_0, window_bounds = array<i64: 16, 32>}, {transform_indices = @transform_1, window_bounds = array<i64: 16, 32>}, {transform_indices = @transform_2, window_bounds = array<i64: 8, 128>}]} {
    %c0_i32 = arith.constant 0 : i32
    %0 = arith.cmpi eq, %arg1, %c0_i32 : i32
    %1 = arith.extui %0 : i1 to i32
    %c0_i32_0 = arith.constant 0 : i32
    %2 = arith.cmpi ne, %1, %c0_i32_0 : i32
    scf.if %2 {
      %cst_16 = arith.constant 0.000000e+00 : f32
      %37 = vector.broadcast %cst_16 : f32 to vector<16x1xf32>
      %c0_17 = arith.constant 0 : index
      %c0_18 = arith.constant 0 : index
      %38 = vector.load %arg5[%c0_17, %c0_18] : memref<16x1xf32, #tpu.memory_space<vmem>>, vector<16x1xf32>
      tpu.vector_store %arg5[%c0_17, %c0_18], %37 {strides = array<i32>} : memref<16x1xf32, #tpu.memory_space<vmem>>, vector<16x1xf32>,
    } else {
    }
    %c0 = arith.constant 0 : index
    %c0_1 = arith.constant 0 : index
    %3 = vector.load %arg2[%c0, %c0_1] : memref<16x32xf32, #tpu.memory_space<vmem>>, vector<16x32xf32>
    %c0_2 = arith.constant 0 : index
    %c0_3 = arith.constant 0 : index
    %4 = vector.load %arg3[%c0_2, %c0_3] : memref<16x32xf32, #tpu.memory_space<vmem>>, vector<16x32xf32>
    %5 = arith.mulf %3, %4 : vector<16x32xf32>
    %cst = arith.constant dense<0.000000e+00> : vector<16xf32>
    %6 = vector.multi_reduction <add>, %5, %cst [1] : vector<16x32xf32> to vector<16xf32>
    %7 = vector.shape_cast %6 : vector<16xf32> to vector<16x1xf32>
    %8 = arith.mulf %3, %3 : vector<16x32xf32>
    %cst_4 = arith.constant dense<0.000000e+00> : vector<16xf32>
    %9 = vector.multi_reduction <add>, %8, %cst_4 [1] : vector<16x32xf32> to vector<16xf32>
    %10 = vector.shape_cast %9 : vector<16xf32> to vector<16x1xf32>
    %11 = arith.mulf %4, %4 : vector<16x32xf32>
    %cst_5 = arith.constant dense<0.000000e+00> : vector<16xf32>
    %12 = vector.multi_reduction <add>, %11, %cst_5 [1] : vector<16x32xf32> to vector<16xf32>
    %13 = vector.shape_cast %12 : vector<16xf32> to vector<16x1xf32>
    %14 = arith.mulf %10, %13 : vector<16x1xf32>
    %cst_6 = arith.constant 1.000000e-16 : f32
    %15 = vector.broadcast %cst_6 : f32 to vector<16x1xf32>
    %16 = arith.maximumf %14, %15 : vector<16x1xf32>
    %17 = math.rsqrt %16 : vector<16x1xf32>
    %18 = arith.mulf %7, %17 : vector<16x1xf32>
    %cst_7 = arith.constant 1.000000e+00 : f32
    %19 = vector.broadcast %cst_7 : f32 to vector<16x1xf32>
    %20 = arith.subf %19, %18 : vector<16x1xf32>
    %c1_i32 = arith.constant 1 : i32
    %21 = arith.muli %arg0, %c1_i32 : i32
    %22 = arith.addi %21, %arg1 : i32
    %c16_i32 = arith.constant 16 : i32
    %23 = arith.muli %22, %c16_i32 : i32
    %24 = tpu.iota {dimensions = array<i32: 0>} : vector<16x1xi32>
    %25 = vector.broadcast %23 : i32 to vector<16x1xi32>
    %26 = arith.addi %25, %24 : vector<16x1xi32>
    %c16_i32_8 = arith.constant 16 : i32
    %27 = vector.broadcast %c16_i32_8 : i32 to vector<16x1xi32>
    %28 = arith.cmpi slt, %26, %27 : vector<16x1xi32>
    %cst_9 = arith.constant 0.000000e+00 : f32
    %29 = vector.broadcast %cst_9 : f32 to vector<16x1xf32>
    %30 = arith.select %28, %20, %29 : vector<16x1xi1>, vector<16x1xf32>
    %c0_10 = arith.constant 0 : index
    %c0_11 = arith.constant 0 : index
    %31 = vector.load %arg5[%c0_10, %c0_11] : memref<16x1xf32, #tpu.memory_space<vmem>>, vector<16x1xf32>
    %32 = arith.addf %31, %30 : vector<16x1xf32>
    %c0_12 = arith.constant 0 : index
    %c0_13 = arith.constant 0 : index
    %33 = vector.load %arg5[%c0_12, %c0_13] : memref<16x1xf32, #tpu.memory_space<vmem>>, vector<16x1xf32>
    tpu.vector_store %arg5[%c0_12, %c0_13], %32 {strides = array<i32>} : memref<16x1xf32, #tpu.memory_space<vmem>>, vector<16x1xf32>,
    %c0_i32_14 = arith.constant 0 : i32
    %34 = arith.cmpi eq, %arg1, %c0_i32_14 : i32
    %35 = arith.extui %34 : i1 to i32
    %c0_i32_15 = arith.constant 0 : i32
    %36 = arith.cmpi ne, %35, %c0_i32_15 : i32
    scf.if %36 {
      %c0_16 = arith.constant 0 : index
      %c0_17 = arith.constant 0 : index
      %37 = vector.load %arg5[%c0_16, %c0_17] : memref<16x1xf32, #tpu.memory_space<vmem>>, vector<16x1xf32>
      %38 = vector.shape_cast %37 : vector<16x1xf32> to vector<1x16x1xf32>
      %cst_18 = arith.constant dense<0.000000e+00> : vector<1xf32>
      %39 = vector.multi_reduction <add>, %38, %cst_18 [1, 2] : vector<1x16x1xf32> to vector<1xf32>
      %40 = vector.shape_cast %39 : vector<1xf32> to vector<1x1x1xf32>
      %41 = vector.extract %40[0, 0, 0] : f32 from vector<1x1x1xf32>
      %42 = tpu.iota {dimensions = array<i32: 0>} : vector<8x128xi32>
      %43 = tpu.iota {dimensions = array<i32: 1>} : vector<8x128xi32>
      %c0_i32_19 = arith.constant 0 : i32
      %44 = vector.broadcast %c0_i32_19 : i32 to vector<8x128xi32>
      %45 = arith.cmpi eq, %42, %44 : vector<8x128xi32>
      %c0_i32_20 = arith.constant 0 : i32
      %46 = vector.broadcast %c0_i32_20 : i32 to vector<8x128xi32>
      %47 = arith.cmpi eq, %43, %46 : vector<8x128xi32>
      %48 = arith.andi %45, %47 : vector<8x128xi1>
      %cst_21 = arith.constant 0.000000e+00 : f32
      %49 = vector.broadcast %41 : f32 to vector<8x128xf32>
      %50 = vector.broadcast %cst_21 : f32 to vector<8x128xf32>
      %51 = arith.select %48, %49, %50 : vector<8x128xi1>, vector<8x128xf32>
      %c0_22 = arith.constant 0 : index
      %c0_23 = arith.constant 0 : index
      %52 = vector.load %arg4[%c0_22, %c0_23] : memref<8x128xf32, #tpu.memory_space<vmem>>, vector<8x128xf32>
      tpu.vector_store %arg4[%c0_22, %c0_23], %51 {strides = array<i32>} : memref<8x128xf32, #tpu.memory_space<vmem>>, vector<8x128xf32>,
    } else {
    }
    return
  }
  func.func @transform_0(%arg0: i32, %arg1: i32) -> (i32, i32) {
    %c1_i32 = arith.constant 1 : i32
    %0 = arith.muli %arg0, %c1_i32 : i32
    %1 = arith.addi %0, %arg1 : i32
    %c0_i32 = arith.constant 0 : i32
    %2 = arith.minsi %1, %c0_i32 : i32
    %c0_i32_0 = arith.constant 0 : i32
    %c0_i32_1 = arith.constant 0 : i32
    return %2, %c0_i32_0 : i32, i32
  }
  func.func @transform_1(%arg0: i32, %arg1: i32) -> (i32, i32) {
    %c1_i32 = arith.constant 1 : i32
    %0 = arith.muli %arg0, %c1_i32 : i32
    %1 = arith.addi %0, %arg1 : i32
    %c0_i32 = arith.constant 0 : i32
    %2 = arith.minsi %1, %c0_i32 : i32
    %c0_i32_0 = arith.constant 0 : i32
    %c0_i32_1 = arith.constant 0 : i32
    return %2, %c0_i32_0 : i32, i32
  }
  func.func @transform_2(%arg0: i32, %arg1: i32) -> (i32, i32) {
    %c0_i32 = arith.constant 0 : i32
    %c0_i32_0 = arith.constant 0 : i32
    return %arg0, %c0_i32 : i32, i32
  }
}

</mosaic_0001>

<bundles_post_ra>
// kernel: tpu_custom_call.1
= control target key start
LH: loop header
LB: loop body
LE: loop exit
PB: predicated region body
PF: predicated region fallthrough
CT: control target
= control target key end

     0   :  { %7 = vsyncpa [#allocation4], 0  ;;  %s323_s0 = inlined_call_operand.hbm [shape: f32[16,32], index: 0, kind: input, shape index: {}]   ;;  %s324_s1 = inlined_call_operand.hbm [shape: f32[16,32], index: 1, kind: input, shape index: {}]   ;;  %s325_s2 = inlined_call_operand.hbm [shape: f32[8,128], index: 2, kind: output, shape index: {}]  }
   0x1   :  { %8 = vsyncpa [#allocation7], 0 }
   0x2   :  { %9 = vsyncpa [#allocation5], 0  ;;  %s254_s9 = smov [#allocation3]   ;;  %s182_s13 = scalar_lea.hbm %s323_s0, 256 }
   0x3   :  { %s21_s10 = sshll.u32 %s254_s9, 4  ;;  %p183_p0 = scmp.ne.s32.totalorder %s323_s0, %s182_s13  ;;  %s22_s10 = int_to_ptr.vmem [resolvable:$true] %s21_s10 }
   0x4   :  { %p186_p1 = scmp.lt.u32.totalorder %s182_s13, %s323_s0 }
   0x6   :  { %p188_p2 = pnand %p186_p1, %p183_p0 }
   0x8   :  { %191 = shalt.err (!%p188_p2)
}
   0x9   :  { %s192_s18 = scalar_lea.vmem %s22_s10, 256  ;;  %p197_p4 = scmp.lt.s32.totalorder %s22_s10, %s22_s10 }
   0xa   :  { %p193_p3 = scmp.ne.s32.totalorder %s22_s10, %s192_s18  ;;  %p198_p5 = scmp.lt.s32.totalorder %s192_s18, %s192_s18 }
   0xc   :  { %p199_p6 = por %p198_p5, %p197_p4 }
   0xe   :  { %p200_p7 = pnand %p199_p6, %p193_p3 }
  0x10   :  { %203 = shalt.err (!%p200_p7)
}
  0x11   :  { %s255_s19 = smov 128   ;;  %s256_s20 = smov 8  }
  0x12   :  { %27 = dma.hbm_to_vmem [thread:$0]  %s323_s0, 256, %s22_s10, [#allocation4], %s255_s19, %s255_s19, %s256_s20  }
  0x13   :  { %s257_s23 = smov [#allocation6]   ;;  %s204_s27 = scalar_lea.hbm %s324_s1, 256 }
  0x14   :  { %s39_s24 = sshll.u32 %s257_s23, 4  ;;  %p205_p8 = scmp.ne.s32.totalorder %s324_s1, %s204_s27  ;;  %s40_s24 = int_to_ptr.vmem [resolvable:$true] %s39_s24 }
  0x15   :  { %p208_p9 = scmp.lt.u32.totalorder %s204_s27, %s324_s1 }
  0x17   :  { %p210_p10 = pnand %p208_p9, %p205_p8 }
  0x19   :  { %213 = shalt.err (!%p210_p10)
}
  0x1a   :  { %s214_s4 = scalar_lea.vmem %s40_s24, 256  ;;  %p219_p12 = scmp.lt.s32.totalorder %s40_s24, %s40_s24 }
  0x1b   :  { %p215_p11 = scmp.ne.s32.totalorder %s40_s24, %s214_s4  ;;  %p220_p13 = scmp.lt.s32.totalorder %s214_s4, %s214_s4 }
  0x1d   :  { %p221_p0 = por %p220_p13, %p219_p12 }
  0x1f   :  { %p222_p1 = pnand %p221_p0, %p215_p11 }
  0x21   :  { %225 = shalt.err (!%p222_p1)
}
  0x22   :  { %45 = dma.hbm_to_vmem [thread:$0]  %s324_s1, 256, %s40_s24, [#allocation7], %s255_s19, %s255_s19, %s256_s20  }
  0x23   :  { %248 = dma.done.wait [#allocation4], 256  }
  0x24   :  { %249 = vsyncadd [#allocation4], 4294967040 }
  0x25   :  { %250 = dma.done.wait [#allocation7], 256  }
  0x26   :  { %251 = vsyncadd [#allocation7], 4294967040  ;;  %v69_v0 = vld [vmem:[#allocation6] sm:$0xff]  ;;  %vm73_vm0 = vcmask 261120   ;;  %v67_v1 = vld [vmem:[#allocation3] sm:$0xff]  ;;  %vm64_vm1 = vcmask 7168   ;;  %v108_v49 = vlaneseq }
  0x27   :  { %v70_v2 = vld [vmem:[#allocation6 + $0x8] sm:$0xff]  ;;  %v88_v3 = vmul.f32 %v69_v0, %v69_v0  ;;  %v80_v4 = vmul.f32 %v67_v1, %v67_v1  ;;  %v68_v6 = vld [vmem:[#allocation3 + $0x8] sm:$0xff]  ;;  %v71_v12 = vmul.f32 %v69_v0, %v67_v1  ;;  %v258_v16 = vmov 0.0   ;;  %s259_s1 = smov [#allocation8]  }
  0x28   :  { %v89_v5 = vmul.f32 %v70_v2, %v70_v2  ;;  %v81_v7 = vmul.f32 %v68_v6, %v68_v6  ;;  %v72_v13 = vmul.f32 %v70_v2, %v68_v6  ;;  %65 = vst.msk [vmem:[#allocation2] sm:$0xff] %vm64_vm1, %v258_v16  ;;  %66 = vst.msk [vmem:[#allocation2 + $0x8] sm:$0xff] %vm64_vm1, %v258_v16  ;;  %v109_v50 = vshrl.u32 %v108_v49, 7  ;;  %s156_s6 = sshll.u32 %s259_s1, 4  ;;  %s157_s6 = int_to_ptr.vmem [resolvable:$true] %s156_s6 }
  0x29   :  { %v90_v8 = vsel %vm73_vm0, %v88_v3, 0.0  ;;  %v82_v9 = vsel %vm73_vm0, %v80_v4, 0.0  ;;  %v74_v14 = vsel %vm73_vm0, %v71_v12, 0.0  ;;  %v143_v51 = vand.u32 127, %v108_v49  ;;  %s226_s8 = scalar_lea.vmem %s157_s6, 128  ;;  %p231_p3 = scmp.lt.s32.totalorder %s157_s6, %s157_s6 }
  0x2a   :  { %91 = vadd.xlane.f32.xlu1 %v90_v8  ;;  %83 = vadd.xlane.f32.xlu0 %v82_v9  ;;  %v93_v10 = vsel %vm73_vm0, %v89_v5, 0.0  ;;  %v85_v11 = vsel %vm73_vm0, %v81_v7, 0.0  ;;  %v77_v15 = vsel %vm73_vm0, %v72_v13, 0.0  ;;  %vm144_vm2 = vcmp.eq.s32.totalorder %v109_v50, 0  ;;  %p227_p2 = scmp.ne.s32.totalorder %s157_s6, %s226_s8  ;;  %p232_p4 = scmp.lt.s32.totalorder %s226_s8, %s226_s8 }
  0x2b   :  { %vm145_vm3 = vcmp.eq.s32.totalorder %v143_v51, 0 }
  0x2c   :  { %vm146_vm4 = vmand %vm144_vm2, %vm145_vm3  ;;  %p233_p5 = por %p232_p4, %p231_p3 }
  0x2e   :  { %94 = vadd.xlane.f32.xlu1 %v93_v10  ;;  %86 = vadd.xlane.f32.xlu0 %v85_v11  ;;  %p234_p6 = pnand %p233_p5, %p227_p2 }
  0x2f   :  { %v118_v28 = vld [vmem:[#allocation2] sm:$0xff]  ;;  %v119_v34 = vld [vmem:[#allocation2 + $0x8] sm:$0xff] }
  0x32   :  { %75 = vadd.xlane.f32.xlu0 %v74_v14  ;;  %78 = vadd.xlane.f32.xlu1 %v77_v15 }
  0xb7   :  { %v92_v17 = vpop.xlane.xlu1 %91  ;;  %v84_v18 = vpop.xlane.xlu0 %83 }
  0xb8   :  { %v96_v19 = vmul.f32 %v92_v17, %v84_v18 }
  0xba   :  { %v98_v20 = vmax.f32 %v96_v19, 1e-16 }
  0xbb   :  { %v95_v21 = vpop.xlane.xlu1 %94  ;;  %v87_v22 = vpop.xlane.xlu0 %86 }
  0xbc   :  { %178 = vrsqrt.f32 %v98_v20  ;;  %v97_v23 = vmul.f32 %v95_v21, %v87_v22 }
  0xbe   :  { %v99_v24 = vmax.f32 %v97_v23, 1e-16 }
  0xbf   :  { %v76_v25 = vpop.xlane.xlu0 %75  ;;  %v79_v29 = vpop.xlane.xlu1 %78 }
  0xc0   :  { %180 = vrsqrt.f32 %v99_v24 }
  0xc6   :  { %v179_v26 = vpop.eup %178 }
  0xc7   :  { %v102_v27 = vmul.f32 %v179_v26, %v76_v25 }
  0xc9   :  { %v104_v30 = vsub.f32 1.0, %v102_v27 }
  0xca   :  { %v181_v31 = vpop.eup %180 }
  0xcb   :  { %v120_v32 = vadd.f32 %v118_v28, %v104_v30  ;;  %v103_v33 = vmul.f32 %v181_v31, %v79_v29 }
  0xcd   :  { %123 = vst.msk [vmem:[#allocation2] sm:$0xff] %vm64_vm1, %v120_v32  ;;  %v105_v35 = vsub.f32 1.0, %v103_v33 }
  0xcf   :  { %v121_v36 = vadd.f32 %v119_v34, %v105_v35 }
  0xd1   :  { %124 = vst.msk [vmem:[#allocation2 + $0x8] sm:$0xff] %vm64_vm1, %v121_v36 }
  0xd4   :  { %v128_v37 = vld [vmem:[#allocation2] sm:$0xff] }
  0xd5   :  { %v130_v39 = vsel %vm64_vm1, %v128_v37, 0.0 }
  0xd8   :  { %v129_v38 = vld [vmem:[#allocation2 + $0x8] sm:$0xff] }
  0xd9   :  { %v131_v40 = vsel %vm64_vm1, %v129_v38, 0.0 }
  0xda   :  { %v132_v41 = vadd.f32 %v131_v40, %v130_v39 }
  0xdc   :  { %133 = vadd.xlane.f32.xlu0 %v132_v41 }
 0x169   :  { %v134_v42 = vpop.xlane.xlu0 %133 }
 0x16a   :  { %v135_v43 = vrot.slane %v134_v42, 4 }
 0x16c   :  { %v136_v44 = vadd.f32 %v135_v43, %v134_v42 }
 0x16e   :  { %v137_v45 = vrot.slane %v136_v44, 2 }
 0x170   :  { %v138_v46 = vadd.f32 %v137_v45, %v136_v44 }
 0x172   :  { %v139_v47 = vrot.slane %v138_v46, 1 }
 0x174   :  { %v140_v48 = vadd.f32 %v139_v47, %v138_v46 }
 0x176   :  { %170 = vpush %v140_v48 }
 0x1a7   :  { %s171_s7 = spop %170 }
 0x1a8   :  { %v147_v52 = vstv %s171_s7 }
 0x1a9   :  { %v148_v53 = vsel %vm146_vm4, %v147_v52, 0.0 }
 0x1aa   :  { %149 = vst [vmem:[#allocation8] sm:$0xff] %v148_v53 }
 0x1ab   :  { %237 = shalt.err (!%p234_p6)
}
 0x1ac   :  { %s238_s11 = scalar_lea.hbm %s325_s2, 128 }
 0x1ad   :  { %p239_p7 = scmp.ne.s32.totalorder %s325_s2, %s238_s11  ;;  %p242_p8 = scmp.lt.u32.totalorder %s238_s11, %s325_s2 }
 0x1af   :  { %p244_p9 = pnand %p242_p8, %p239_p7 }
 0x1b1   :  { %247 = shalt.err (!%p244_p9)
}
 0x1b2   :  { %159 = dma.vmem_to_hbm [thread:$0]  %s157_s6, 128, %s325_s2, [#allocation5]  }
 0x1b3   :  { %252 = dma.done.wait [#allocation5], 128  }
 0x1b4   :  { %253 = vsyncadd [#allocation5], 4294967168 }
 0x1b5   :  { %163 = vsyncpa [#allocation4], 1 }
 0x1b6   :  { %164 = vsyncpa [#allocation7], 1 }
 0x1b7   :  { %165 = vsyncpa [#allocation5], 1 }

</bundles_post_ra>
